<compile_context>
chip_gen: v5e
topology: v5e:2x2
jax: 0.10.0
libtpu: 0.0.40
codegen_flags: <defaults>
</compile_context>

<pallas_src>
import functools

import jax
import jax.numpy as jnp
import numpy as np
from jax import lax
from jax.experimental import pallas as pl
from jax.experimental.pallas import tpu as pltpu


def bert_self_output_kernel(x_ref, res_ref, w_ref, b_ref, gamma_ref, beta_ref,
                            out_ref, *, eps, inv_h):
    # dense: y = x @ W^T + b  (W pre-transposed to [H_in, H_out] in the wrapper).
    # bf16 operands, f32 MXU accumulation.
    y = jnp.dot(x_ref[...], w_ref[...], preferred_element_type=jnp.float32)

    # dropout: identity in eval mode; add bias + residual in f32.
    y = y + b_ref[...] + res_ref[...].astype(jnp.float32)

    # LayerNorm over the hidden dim (biased variance, torch semantics), f32.
    # Both cross-lane reductions are issued back-to-back so the XLU can
    # pipeline them; var = E[y^2] - mean^2 (clamped for numerical safety).
    s1 = jnp.sum(y, axis=-1, keepdims=True)
    s2 = jnp.sum(y * y, axis=-1, keepdims=True)
    mean = s1 * inv_h
    var = jnp.maximum(s2 * inv_h - mean * mean, 0.0)
    yhat = (y - mean) * lax.rsqrt(var + eps)
    out_ref[...] = (yhat * gamma_ref[...] + beta_ref[...]).astype(out_ref.dtype)


def _pick_tok_block(n_rows):
    # Largest sublane-aligned row tile that still leaves >= 2 grid steps
    # (so the "parallel" row axis can shard across both TensorCores on v7x).
    # Per-grid-step overhead (~0.35 us) is well amortized at 512-1024 rows.
    for tb in (1024, 512, 256, 128, 64, 32, 16, 8):
        if n_rows >= 2 * tb:
            return tb
    return 8


def bert_self_output(hidden_states, input_tensor, weight, bias, gamma, beta,
                     *, eps=1e-12, tok_block=None):
    """LayerNorm(dropout(hidden_states @ W^T + b) + input_tensor), eval mode.

    Activations and weight stay in their model dtype (bf16 for real BERT
    deployments); LN statistics run in f32 inside the kernel; the output is
    emitted in hidden_states.dtype.
    """
    B, S, H = hidden_states.shape
    N = B * S
    out_dtype = hidden_states.dtype

    if tok_block is None:
        tok_block = _pick_tok_block(N)

    # Flatten tokens to rows; no wrapper-side dtype copies of the activations.
    x = hidden_states.reshape(N, H)
    res = input_tensor.reshape(N, H)

    # nn.Linear computes x @ W^T.  In a real model, store the weight already
    # transposed ([H_in, H_out]) so this is a no-op / folds at compile time;
    # here it happens once per call, outside the kernel, with no dtype change.
    w_t = weight.T

    # Bias / LN params stay in f32 (tiny tensors; exact epilogue numerics).
    b2 = bias.reshape(1, H).astype(jnp.float32)
    gamma2 = gamma.reshape(1, H).astype(jnp.float32)
    beta2 = beta.reshape(1, H).astype(jnp.float32)

    # Pad the token dim to a tile multiple (keeps large, evenly pipelined
    # lane-dense tiles even for awkward N); padded rows are sliced off below.
    n_pad = (-N) % tok_block
    if n_pad:
        x = jnp.pad(x, ((0, n_pad), (0, 0)))
        res = jnp.pad(res, ((0, n_pad), (0, 0)))
    n_rows = N + n_pad

    act_bytes = jnp.dtype(x.dtype).itemsize
    w_bytes = jnp.dtype(w_t.dtype).itemsize
    cost = pl.CostEstimate(
        flops=2 * n_rows * H * H + 10 * n_rows * H,
        transcendentals=n_rows,
        bytes_accessed=act_bytes * 3 * n_rows * H + w_bytes * H * H + 4 * 3 * H,
    )

    kernel = functools.partial(bert_self_output_kernel, eps=eps, inv_h=1.0 / H)

    out = pl.pallas_call(
        kernel,
        out_shape=jax.ShapeDtypeStruct((n_rows, H), out_dtype),
        grid_spec=pltpu.PrefetchScalarGridSpec(
            num_scalar_prefetch=0,
            grid=(n_rows // tok_block,),
            in_specs=[
                pl.BlockSpec((tok_block, H), lambda i: (i, 0)),   # hidden_states tile
                pl.BlockSpec((tok_block, H), lambda i: (i, 0)),   # residual tile
                # Constant-index blocks: fetched once, reused across the grid.
                pl.BlockSpec((H, H), lambda i: (0, 0)),           # W^T (bf16)
                pl.BlockSpec((1, H), lambda i: (0, 0)),           # bias (f32)
                pl.BlockSpec((1, H), lambda i: (0, 0)),           # LN gamma (f32)
                pl.BlockSpec((1, H), lambda i: (0, 0)),           # LN beta (f32)
            ],
            out_specs=pl.BlockSpec((tok_block, H), lambda i: (i, 0)),
        ),
        compiler_params=pltpu.CompilerParams(
            dimension_semantics=("parallel",),
            vmem_limit_bytes=48 * 1024 * 1024,   # below v7x's 64 MiB physical VMEM
        ),
        cost_estimate=cost,
    )(x, res, w_t, b2, gamma2, beta2)

    if n_pad:
        out = out[:N]
    return out.reshape(B, S, H)


def bert_self_output_ref(hidden_states, input_tensor, weight, bias, gamma, beta,
                         *, eps=1e-12):
    y = jnp.einsum("bsh,oh->bso", hidden_states, weight) + bias
    y = y + input_tensor
    mean = jnp.mean(y, axis=-1, keepdims=True)
    var = jnp.mean((y - mean) ** 2, axis=-1, keepdims=True)
    yhat = (y - mean) * lax.rsqrt(var + eps)
    return yhat * gamma + beta


if __name__ == "__main__":
    # small "config": hidden_size=128 (lane-dense), layer_norm_eps=1e-12,
    # dropout irrelevant in eval; batch=2, seq=8
    B, S, H = 2, 8, 128
    EPS = 1e-12

    key = jax.random.PRNGKey(0)
    k_x, k_res, k_w, k_b, k_g, k_beta = jax.random.split(key, 6)

    # Model dtype = bf16 (activations + weight), f32 bias/LN params.
    hidden_states = jax.random.normal(k_x, (B, S, H), jnp.float32).astype(jnp.bfloat16)
    input_tensor = jax.random.normal(k_res, (B, S, H), jnp.float32).astype(jnp.bfloat16)
    weight = (0.02 * jax.random.normal(k_w, (H, H), jnp.float32)).astype(jnp.bfloat16)
    bias = 0.01 * jax.random.normal(k_b, (H,), jnp.float32)
    gamma = jnp.ones((H,), jnp.float32) + 0.01 * jax.random.normal(k_g, (H,), jnp.float32)
    beta = 0.01 * jax.random.normal(k_beta, (H,), jnp.float32)

    out = bert_self_output(hidden_states, input_tensor, weight, bias,
                           gamma, beta, eps=EPS)
    out = jax.block_until_ready(out)

    # f32 reference using the same (bf16-rounded) inputs.
    ref = bert_self_output_ref(hidden_states.astype(jnp.float32),
                               input_tensor.astype(jnp.float32),
                               weight.astype(jnp.float32),
                               bias, gamma, beta, eps=EPS)
    np.testing.assert_allclose(np.asarray(out.astype(jnp.float32)),
                               np.asarray(ref), rtol=2e-2, atol=2e-2)
    assert out.shape == (B, S, H) and out.dtype == jnp.bfloat16
    print("KERNEL_OK")
</pallas_src>

<mosaic_0001>
module attributes {stable_mosaic.version = 11 : i64} {
  func.func @bert_self_output_kernel(%arg0: i32, %arg1: memref<8x128xbf16, #tpu.memory_space<vmem>>, %arg2: memref<8x128xbf16, #tpu.memory_space<vmem>>, %arg3: memref<128x128xbf16, #tpu.memory_space<vmem>>, %arg4: memref<1x128xf32, #tpu.memory_space<vmem>>, %arg5: memref<1x128xf32, #tpu.memory_space<vmem>>, %arg6: memref<1x128xf32, #tpu.memory_space<vmem>>, %arg7: memref<8x128xbf16, #tpu.memory_space<vmem>>) attributes {dimension_semantics = [#tpu.dimension_semantics<parallel>], iteration_bounds = array<i64: 2>, scalar_prefetch = 0 : i64, scratch_operands = 0 : i64, tpu.core_type = #tpu.core_type<tc>, window_params = [{transform_indices = @transform_0, window_bounds = array<i64: 8, 128>}, {transform_indices = @transform_1, window_bounds = array<i64: 8, 128>}, {pipeline_mode = #tpu.pipeline_mode<synchronous>, transform_indices = @transform_2, window_bounds = array<i64: 128, 128>}, {pipeline_mode = #tpu.pipeline_mode<synchronous>, transform_indices = @transform_3, window_bounds = array<i64: 1, 128>}, {pipeline_mode = #tpu.pipeline_mode<synchronous>, transform_indices = @transform_4, window_bounds = array<i64: 1, 128>}, {pipeline_mode = #tpu.pipeline_mode<synchronous>, transform_indices = @transform_5, window_bounds = array<i64: 1, 128>}, {transform_indices = @transform_6, window_bounds = array<i64: 8, 128>}]} {
    %c0 = arith.constant 0 : index
    %c0_0 = arith.constant 0 : index
    %0 = vector.load %arg1[%c0, %c0_0] : memref<8x128xbf16, #tpu.memory_space<vmem>>, vector<8x128xbf16>
    %c0_1 = arith.constant 0 : index
    %c0_2 = arith.constant 0 : index
    %1 = vector.load %arg3[%c0_1, %c0_2] : memref<128x128xbf16, #tpu.memory_space<vmem>>, vector<128x128xbf16>
    %cst = arith.constant dense<0.000000e+00> : vector<8x128xf32>
    %2 = tpu.matmul %0, %1, %cst {dimension_numbers = #tpu.dot_dimension_numbers<[1], [0], [0], [1], [0, 0, 1, 1], [], []>} : vector<8x128xbf16>, vector<128x128xbf16>, vector<8x128xf32> -> vector<8x128xf32>
    %c0_3 = arith.constant 0 : index
    %c0_4 = arith.constant 0 : index
    %3 = vector.load %arg4[%c0_3, %c0_4] : memref<1x128xf32, #tpu.memory_space<vmem>>, vector<1x128xf32>
    %4 = vector.broadcast %3 : vector<1x128xf32> to vector<8x128xf32>
    %5 = arith.addf %2, %4 : vector<8x128xf32>
    %c0_5 = arith.constant 0 : index
    %c0_6 = arith.constant 0 : index
    %6 = vector.load %arg2[%c0_5, %c0_6] : memref<8x128xbf16, #tpu.memory_space<vmem>>, vector<8x128xbf16>
    %7 = arith.extf %6 : vector<8x128xbf16> to vector<8x128xf32>
    %8 = arith.addf %5, %7 : vector<8x128xf32>
    %cst_7 = arith.constant dense<0.000000e+00> : vector<8xf32>
    %9 = vector.multi_reduction <add>, %8, %cst_7 [1] : vector<8x128xf32> to vector<8xf32>
    %10 = vector.shape_cast %9 : vector<8xf32> to vector<8x1xf32>
    %11 = arith.mulf %8, %8 : vector<8x128xf32>
    %cst_8 = arith.constant dense<0.000000e+00> : vector<8xf32>
    %12 = vector.multi_reduction <add>, %11, %cst_8 [1] : vector<8x128xf32> to vector<8xf32>
    %13 = vector.shape_cast %12 : vector<8xf32> to vector<8x1xf32>
    %cst_9 = arith.constant 7.812500e-03 : f32
    %14 = vector.broadcast %cst_9 : f32 to vector<8x1xf32>
    %15 = arith.mulf %10, %14 : vector<8x1xf32>
    %cst_10 = arith.constant 7.812500e-03 : f32
    %16 = vector.broadcast %cst_10 : f32 to vector<8x1xf32>
    %17 = arith.mulf %13, %16 : vector<8x1xf32>
    %18 = arith.mulf %15, %15 : vector<8x1xf32>
    %19 = arith.subf %17, %18 : vector<8x1xf32>
    %cst_11 = arith.constant 0.000000e+00 : f32
    %20 = vector.broadcast %cst_11 : f32 to vector<8x1xf32>
    %21 = arith.maximumf %19, %20 : vector<8x1xf32>
    %22 = vector.broadcast %15 : vector<8x1xf32> to vector<8x128xf32>
    %23 = arith.subf %8, %22 : vector<8x128xf32>
    %cst_12 = arith.constant 9.99999996E-13 : f32
    %24 = vector.broadcast %cst_12 : f32 to vector<8x1xf32>
    %25 = arith.addf %21, %24 : vector<8x1xf32>
    %26 = math.rsqrt %25 : vector<8x1xf32>
    %27 = vector.broadcast %26 : vector<8x1xf32> to vector<8x128xf32>
    %28 = arith.mulf %23, %27 : vector<8x128xf32>
    %c0_13 = arith.constant 0 : index
    %c0_14 = arith.constant 0 : index
    %29 = vector.load %arg5[%c0_13, %c0_14] : memref<1x128xf32, #tpu.memory_space<vmem>>, vector<1x128xf32>
    %30 = vector.broadcast %29 : vector<1x128xf32> to vector<8x128xf32>
    %31 = arith.mulf %28, %30 : vector<8x128xf32>
    %c0_15 = arith.constant 0 : index
    %c0_16 = arith.constant 0 : index
    %32 = vector.load %arg6[%c0_15, %c0_16] : memref<1x128xf32, #tpu.memory_space<vmem>>, vector<1x128xf32>
    %33 = vector.broadcast %32 : vector<1x128xf32> to vector<8x128xf32>
    %34 = arith.addf %31, %33 : vector<8x128xf32>
    %35 = arith.truncf %34 : vector<8x128xf32> to vector<8x128xbf16>
    %c0_17 = arith.constant 0 : index
    %c0_18 = arith.constant 0 : index
    %36 = vector.load %arg7[%c0_17, %c0_18] : memref<8x128xbf16, #tpu.memory_space<vmem>>, vector<8x128xbf16>
    tpu.vector_store %arg7[%c0_17, %c0_18], %35 {strides = array<i32>} : memref<8x128xbf16, #tpu.memory_space<vmem>>, vector<8x128xbf16>,
    return
  }
  func.func @transform_0(%arg0: i32) -> (i32, i32) {
    %c0_i32 = arith.constant 0 : i32
    %c0_i32_0 = arith.constant 0 : i32
    return %arg0, %c0_i32 : i32, i32
  }
  func.func @transform_1(%arg0: i32) -> (i32, i32) {
    %c0_i32 = arith.constant 0 : i32
    %c0_i32_0 = arith.constant 0 : i32
    return %arg0, %c0_i32 : i32, i32
  }
  func.func @transform_2(%arg0: i32) -> (i32, i32) {
    %c0_i32 = arith.constant 0 : i32
    %c0_i32_0 = arith.constant 0 : i32
    %c0_i32_1 = arith.constant 0 : i32
    return %c0_i32, %c0_i32_0 : i32, i32
  }
  func.func @transform_3(%arg0: i32) -> (i32, i32) {
    %c0_i32 = arith.constant 0 : i32
    %c0_i32_0 = arith.constant 0 : i32
    %c0_i32_1 = arith.constant 0 : i32
    return %c0_i32, %c0_i32_0 : i32, i32
  }
  func.func @transform_4(%arg0: i32) -> (i32, i32) {
    %c0_i32 = arith.constant 0 : i32
    %c0_i32_0 = arith.constant 0 : i32
    %c0_i32_1 = arith.constant 0 : i32
    return %c0_i32, %c0_i32_0 : i32, i32
  }
  func.func @transform_5(%arg0: i32) -> (i32, i32) {
    %c0_i32 = arith.constant 0 : i32
    %c0_i32_0 = arith.constant 0 : i32
    %c0_i32_1 = arith.constant 0 : i32
    return %c0_i32, %c0_i32_0 : i32, i32
  }
  func.func @transform_6(%arg0: i32) -> (i32, i32) {
    %c0_i32 = arith.constant 0 : i32
    %c0_i32_0 = arith.constant 0 : i32
    return %arg0, %c0_i32 : i32, i32
  }
}

</mosaic_0001>

<bundles_post_ra>
// kernel: tpu_custom_call.1
= control target key start
LH: loop header
LB: loop body
LE: loop exit
PB: predicated region body
PF: predicated region fallthrough
CT: control target
= control target key end

     0   :  { %s1071_s0 = inlined_call_operand.hbm [shape: bf16[16,128], index: 0, kind: input, shape index: {}]   ;;  %s1072_s1 = inlined_call_operand.hbm [shape: bf16[16,128], index: 1, kind: input, shape index: {}]   ;;  %s1073_s2 = inlined_call_operand.hbm [shape: bf16[128,128], index: 2, kind: input, shape index: {}]   ;;  %s1074_s3 = inlined_call_operand.vmem [shape: f32[1,128], index: 3, kind: input, shape index: {}]   ;;  %s1075_s4 = inlined_call_operand.vmem [shape: f32[1,128], index: 4, kind: input, shape index: {}]   ;;  %s1076_s5 = inlined_call_operand.vmem [shape: f32[1,128], index: 5, kind: input, shape index: {}]   ;;  %s1077_s6 = inlined_call_operand.hbm [shape: bf16[16,128], index: 6, kind: output, shape index: {}]  }
   0x1   :  { %1082 = sst [smem:[#allocation17_spill]] %s1073_s2 }
   0x2   :  { %11 = vsyncpa [#allocation3], 0 }
   0x3   :  { %13 = vsyncpa [#allocation3 + $0x1], 0 }
   0x4   :  { %14 = vsyncpa [#allocation6], 0 }
   0x5   :  { %16 = vsyncpa [#allocation6 + $0x1], 0 }
   0x6   :  { %17 = vsyncpa [#allocation4], 0 }
   0x7   :  { %19 = vsyncpa [#allocation4 + $0x1], 0  ;;  %s892_s21 = smov 0   ;;  %s894_s22 = smov 0  }
   0x8   :  { %s896_s23 = smov 0   ;;  %s898_s24 = smov 0  }
   0x9 LB: > { %1083 = sst [smem:[#allocation13_spill]] %s848_s23  ;;  %s916_s28 = sadd.s32 4294967295, %s852_s24   ;;  %s852_s24 = sphi %s898_s24, %s1096_s24   ;;  %s848_s23 = sphi %s896_s23, %s1098_s23   ;;  %s844_s22 = sphi %s894_s22, %s1100_s22   ;;  %s840_s21 = sphi %s892_s21, %s1099_s21  }
   0xa   : > { %1084 = sst [smem:[#allocation14_spill]] %s852_s24  ;;  %p563_p0 = scmp.ge.s32.totalorder %s852_s24, 1 }
   0xb   : > { %s1085_s2 = sld [smem:[#allocation17_spill]]  ;;  %p46_p1 = scmp.eq.s32.totalorder %s916_s28, 0 }
   0xc   : > { %p192_p2 = scmp.lt.s32.totalorder %s852_s24, 3  ;;  %s854_s30 = smov [#allocation7]  }
   0xd   : > { %s205_s7 = sshll.u32 %s854_s30, 4  ;;  %s855_s8 = smov 64   ;;  %s206_s7 = int_to_ptr.vmem [resolvable:$true] %s205_s7 }
   0xe   : > { %p921_p3 = pnand %p563_p0, %p192_p2  ;;  %s856_s9 = smov 4  }
   0xf   : > { %s562_s10 = sadd.s32 4294967294, %s852_s24   ;;  %s932_s11 = sadd.s32 1, %s852_s24  }
  0x10   : > { %p629_p4 = pneg %p921_p3  ;;  %1087 = sst [smem:[#allocation15_spill]] %s932_s11 }
  0x11   : > { %s203_s27 = sshll.u32 %s1085_s2, 4  ;;  %s32_s12 = sadd.s32 1, %s848_s23  ;;  %s204_s27 = int_to_ptr.hbm [resolvable:$true] %s203_s27 }
  0x12   : > { %p630_p6 = pnand %p629_p4, %p46_p1  ;;  %s29_s13 = ssub.s32 %s852_s24, %s932_s11 }
  0x13   : > { %p39_p7 = scmp.ne.s32.totalorder %s848_s23, %s844_s22  ;;  %p30_p8 = scmp.eq.s32.totalorder %s29_s13, 0 }
  0x14   : > { %632 = dma.hbm_to_vmem [thread:$0]  (!%p630_p6), %s204_s27, 1024, %s206_s7, [#allocation6], %s855_s8, %s855_s8, %s856_s9  }
  0x15   : > { %p40_p9 = scmp.eq.s32.totalorder %s852_s24, 0  ;;  %p45_p10 = scmp.ne.s32.totalorder %s844_s22, %s840_s21 }
  0x16   : > { %p179_p11 = scmp.eq.s32.totalorder %s916_s28, 1  ;;  %p185_p2 = scmp.eq.s32.totalorder %s562_s10, 1 }
  0x17   : > { %s944_s14 = scalar_select %p30_p8, %s848_s23, %s32_s12  }
  0x18   : > { %p946_p12 = por %p40_p9, %p39_p7  ;;  %p952_p13 = por %p46_p1, %p45_p10 }
  0x19   : > { %1088 = sst [smem:[#allocation16_spill]] %s944_s14  ;;  %p956_p0 = por %p179_p11, %p39_p7 }
  0x1a   : > { %p645_p4 = scmp.lt.s32.totalorder %s852_s24, 2  ;;  %s228_s18 = sand.u32 1, %s848_s23  }
  0x1b   : > { %p962_p6 = por %p185_p2, %p45_p10  ;;  %s566_s20 = sshll.u32 %s228_s18, 2 }
  0x1c   : > { %s567_s25 = sshll.u32 %s852_s24, 2  ;;  %s232_s8 = scalar_lea.vmem [#allocation2], %s566_s20 }
  0x1d   : > { %s236_s30 = scalar_lea.hbm %s1071_s0, %s567_s25  ;;  %s240_s9 = sshll.u32 %s232_s8, 4  ;;  %s241_s9 = int_to_ptr.vmem [resolvable:$true] %s240_s9 }
  0x1e   : > { %s238_s7 = sshll.u32 %s236_s30, 4  ;;  %p972_p7 = pnand %p645_p4, %p946_p12  ;;  %s239_s7 = int_to_ptr.hbm [resolvable:$true] %s238_s7 }
  0x1f   : > { %s255_s2 = scalar_lea.hbm %s1072_s1, %s567_s25  ;;  %s247_s14 = sand.u32 1, %s852_s24  }
  0x20   : > { %s229_s23 = scalar_lea.sflag [#allocation3], %s228_s18  ;;  %s718_s26 = sshra.s32 %s239_s7, 4  ;;  %s719_s26 = int_to_ptr.hbm [resolvable:$true] %s718_s26 }
  0x21   : > { %s720_s27 = scalar_lea.hbm %s719_s26, 4  ;;  %p722_p9 = pneg %p972_p7 }
  0x22   : > { %p721_p8 = scmp.ne.s32.totalorder %s719_s26, %s720_s27  ;;  %s725_s8 = scalar_lea.hbm %s1071_s0, 8 }
  0x23   : > { %p726_p12 = scmp.lt.s32.totalorder %s719_s26, %s1071_s0  ;;  %p727_p2 = scmp.lt.s32.totalorder %s725_s8, %s720_s27 }
  0x24   : > { %p723_p10 = pnand %p722_p9, %p721_p8 }
  0x25   : > { %p728_p4 = por %p727_p2, %p726_p12 }
  0x26   : > { %p724_p11 = pneg %p723_p10 }
  0x28   : > { %p729_p5 = pnand %p728_p4, %p724_p11 }
  0x2a   : > { %732 = shalt.err (!%p729_p5)
}
  0x2b   : > { %636 = dma.hbm_to_vmem [thread:$0]  (!%p972_p7), %s239_s7, 64, %s241_s9, %s229_s23  }
  0x2c   : > { %s257_s18 = sshll.u32 %s255_s2, 4  ;;  %s251_s25 = scalar_lea.vmem [#allocation5], %s566_s20  ;;  %s258_s18 = int_to_ptr.hbm [resolvable:$true] %s257_s18 }
  0x2d   : > { %s259_s11 = sshll.u32 %s251_s25, 4  ;;  %s248_s24 = scalar_lea.sflag [#allocation6], %s247_s14  ;;  %s260_s11 = int_to_ptr.vmem [resolvable:$true] %s259_s11 }
  0x2e   : > { %s748_s15 = sshra.s32 %s258_s18, 4  ;;  %s755_s8 = scalar_lea.hbm %s1072_s1, 8  ;;  %s749_s15 = int_to_ptr.hbm [resolvable:$true] %s748_s15 }
  0x2f   : > { %s750_s30 = scalar_lea.hbm %s749_s15, 4  ;;  %p756_p5 = scmp.lt.s32.totalorder %s749_s15, %s1072_s1 }
  0x30   : > { %p751_p8 = scmp.ne.s32.totalorder %s749_s15, %s750_s30  ;;  %p757_p11 = scmp.lt.s32.totalorder %s755_s8, %s750_s30 }
  0x32   : > { %p753_p10 = pnand %p751_p8, %p722_p9  ;;  %p758_p2 = por %p757_p11, %p756_p5 }
  0x34   : > { %p754_p12 = pneg %p753_p10 }
  0x36   : > { %p759_p4 = pnand %p758_p2, %p754_p12 }
  0x38   : > { %762 = shalt.err (!%p759_p4)
}
  0x39   : > { %639 = dma.hbm_to_vmem [thread:$0]  (!%p972_p7), %s258_s18, 64, %s260_s11, %s248_s24  }
  0x3a   : > { %268 = sbr.rel (%p921_p3) target bundleno = 392 (0x188), region = 44  ;;  %s1007_s2 = sand.u32 (!%p921_p3), 1, %s844_s22  }
  0x3b   : > { %s1010_s14 = sshll.u32 (!%p921_p3), %s1007_s2, 2  ;;  %s271_s20 = scalar_lea.sflag (!%p921_p3), [#allocation3], %s1007_s2 }
  0x3c   : > { %s274_s7 = scalar_lea.vmem (!%p921_p3), [#allocation2], %s1010_s14 }
  0x3f   : > { %823 = dma.done.wait (%p952_p13), %s271_s20, 64  }
  0x40   : > { %825 = vsyncadd (%p952_p13), %s271_s20, 4294967232  ;;  %s280_s24 = sand.u32 1, %s916_s28   ;;  %s284_s11 = scalar_lea.vmem [#allocation5], %s1010_s14 }
  0x41   : > { %s281_s29 = scalar_lea.sflag [#allocation6], %s280_s24 }
  0x42   : > { %827 = dma.done.wait (%p952_p13), %s281_s29, 64  }
  0x43   : > { %829 = vsyncadd (%p952_p13), %s281_s29, 4294967232 }
  0x44   : > { %831 = dma.done.wait (%p46_p1), [#allocation6], 1024  }
  0x45   : > { %833 = vsyncadd (%p46_p1), [#allocation6], 4294966272  ;;  %v618_v0 = vld [vmem:[#allocation7 + $0x38] sm:$0xff]  ;;  %v617_v1 = vld [vmem:[#allocation7 + $0x30] sm:$0xff]  ;;  %s608_s10 = sshll.u32 %s916_s28, 2  ;;  %s323_s28 = scalar_lea.vmem [#allocation8], %s1010_s14 }
  0x46   : > { %393 = vmatpush.bf16.msra.mxu0 %v618_v0  ;;  %v616_v2 = vld [vmem:[#allocation7 + $0x28] sm:$0xff]  ;;  %v615_v3 = vld [vmem:[#allocation7 + $0x20] sm:$0xff]  ;;  %v614_v4 = vld [vmem:[#allocation7 + $0x18] sm:$0xff]  ;;  %s455_s27 = scalar_lea.hbm %s1077_s6, %s608_s10  ;;  %s457_s8 = sshll.u32 %s323_s28, 4  ;;  %s458_s8 = int_to_ptr.vmem [resolvable:$true] %s457_s8 }
  0x47   : > { %v613_v5 = vld [vmem:[#allocation7 + $0x10] sm:$0xff]  ;;  %v612_v6 = vld [vmem:[#allocation7 + $0x8] sm:$0xff]  ;;  %v611_v7 = vld [vmem:[#allocation7] sm:$0xff]  ;;  %s459_s12 = sshll.u32 %s455_s27, 4  ;;  %s445_s23 = scalar_lea.sflag [#allocation4], %s1007_s2  ;;  %s460_s12 = int_to_ptr.hbm [resolvable:$true] %s459_s12 }
  0x48   : > { %v324_v8 = vld [vmem:[%s274_s7] sm:$0xf]  ;;  %v406_v9 = vld [vmem:[%s284_s11] sm:$0xf]  ;;  %s792_s20 = sshra.s32 %s460_s12, 4  ;;  %s798_s11 = scalar_lea.hbm %s1077_s6, 8  ;;  %s793_s20 = int_to_ptr.hbm [resolvable:$true] %s792_s20 }
  0x49   : > { %v683_v10 = vld [vmem:[%s1074_s3] ss:$0 sm:$0xff]  ;;  %v407_v11 = vunpack.c.l.bf16 %v406_v9  ;;  %s794_s7 = scalar_lea.hbm %s793_s20, 4  ;;  %p799_p7 = scmp.lt.s32.totalorder %s793_s20, %s1077_s6 }
  0x4a   : > { %394 = vmatpush.bf16.msra.mxu0 %v617_v1  ;;  %v684_v32 = vld [vmem:[%s1075_s4] ss:$0 sm:$0xff]  ;;  %p795_p1 = scmp.ne.s32.totalorder %s793_s20, %s794_s7  ;;  %p800_p9 = scmp.lt.s32.totalorder %s798_s11, %s794_s7 }
  0x4b   : > { %v685_v35 = vld [vmem:[%s1076_s5] ss:$0 sm:$0xff] }
  0x4c   : > { %p796_p3 = pnand %p795_p1, %p956_p0  ;;  %p801_p8 = por %p800_p9, %p799_p7 }
  0x4e   : > { %395 = vmatpush.bf16.msra.mxu0 %v616_v2  ;;  %p797_p13 = pneg %p796_p3 }
  0x50   : > { %p802_p10 = pnand %p801_p8, %p797_p13 }
  0x52   : > { %396 = vmatpush.bf16.msra.mxu0 %v615_v3 }
  0x56   : > { %397 = vmatpush.bf16.msra.mxu0 %v614_v4 }
  0x5a   : > { %398 = vmatpush.bf16.msra.mxu0 %v613_v5 }
  0x5e   : > { %399 = vmatpush.bf16.msra.mxu0 %v612_v6 }
  0x62   : > { %400 = vmatpush.bf16.msra.mxu0 %v611_v7 }
  0x65   : > { %401 = vmatmul.bf16.vlgmr.msra.gmra.mxu0 %v324_v8 }
  0xe2   : > { %v402_v12 = vpop.f32.mrf.mxu0 }
  0xe3   : > { %v403_v13 = vadd.f32 %v683_v10, %v402_v12 }
  0xe5   : > { %v408_v14 = vadd.f32 %v407_v11, %v403_v13 }
  0xe7   : > { %409 = vadd.xlane.f32.xlu0 %v408_v14  ;;  %v411_v16 = vmul.f32 %v408_v14, %v408_v14 }
  0xea   : > { %v404_v15 = vpop.f32.mrf.mxu0 }
  0xef   : > { %412 = vadd.xlane.f32.xlu0 %v411_v16 }
 0x15a   : > { %v410_v17 = vpop.xlane.xlu0 %409 }
 0x15b   : > { %v414_v18 = vmul.f32 0.0078125, %v410_v17 }
 0x15d   : > { %v416_v20 = vmul.f32 %v414_v18, %v414_v18  ;;  %v419_v31 = vsub.f32 %v408_v14, %v414_v18 }
 0x162   : > { %v413_v19 = vpop.xlane.xlu0 %412 }
 0x163   : > { %v415_v21 = vmul.f32 0.0078125, %v413_v19 }
 0x165   : > { %v417_v22 = vsub.f32 %v415_v21, %v416_v20 }
 0x167   : > { %v418_v23 = vmax.f32 %v417_v22, 0.0 }
 0x169   : > { %v420_v24 = vadd.f32 1e-12, %v418_v23 }
 0x16b   : > { %686 = vrsqrt.f32 %v420_v24  ;;  %vm427_vm1 = vweird.f32 %v420_v24 }
 0x171   : > { %v687_v25 = vpop.eup %686 }
 0x172   : > { %v422_v26 = vmul.f32 %v687_v25, %v420_v24  ;;  %vm428_vm0 = vweird.f32 %v687_v25 }
 0x173   : > { %vm429_vm2 = vmor %vm427_vm1, %vm428_vm0 }
 0x174   : > { %v423_v27 = vmul.f32 %v687_v25, %v422_v26 }
 0x176   : > { %v424_v28 = vmul.f32 0.5, %v423_v27 }
 0x178   : > { %v425_v29 = vsub.f32 1.5, %v424_v28 }
 0x17a   : > { %v426_v30 = vmul.f32 %v687_v25, %v425_v29 }
 0x17c   : > { %v430_v33 = vsel %vm429_vm2, %v687_v25, %v426_v30 }
 0x17d   : > { %v431_v34 = vmul.f32 %v430_v33, %v419_v31 }
 0x17f   : > { %v436_v36 = vmul.f32 %v684_v32, %v431_v34 }
 0x181   : > { %v441_v37 = vadd.f32 %v685_v35, %v436_v36 }
 0x183   : > { %v442_v38 = vpack.c.bf16 %v441_v37, %v441_v37 }
 0x185   : > { %443 = vst [vmem:[%s323_s28] sm:$0xf] %v442_v38 }
 0x186   : > { %805 = shalt.err (!%p802_p10)
}
 0x187   : > { %627 = dma.vmem_to_hbm [thread:$0]  (%p956_p0), %s458_s8, 64, %s460_s12, %s445_s23  }
 0x188 PF: > { %s1094_s2 = sld [smem:[#allocation14_spill]]  ;;  %s471_s9 = sand.u32 1, %s840_s21  }
 0x189   : > { %s472_s10 = scalar_lea.sflag [#allocation4], %s471_s9 }
 0x18e   : > { %p1095_p12 = scmp.ge.s32.totalorder %s1094_s2, 2 }
 0x190   : > { %p641_p5 = pnand %p1095_p12, %p962_p6 }
 0x192   : > { %p642_p11 = pneg %p641_p5 }
 0x194   : > { %835 = dma.done.wait (%p642_p11), %s472_s10, 64  }
 0x195   : > { %837 = vsyncadd (%p642_p11), %s472_s10, 4294967232  ;;  %s1096_s24 = sld [smem:[#allocation15_spill]]  ;;  %s1099_s21 = smov %s844_s22 }
 0x196   : > { %s1097_s13 = sld [smem:[#allocation13_spill]] }
 0x197   : > { %s1098_s23 = sld [smem:[#allocation16_spill]] }
 0x19b   : > { %p22_p2 = scmp.ge.s32.totalorder %s1096_s24, 4  }
 0x19c   : > { %s1100_s22 = smov %s1097_s13 }
 0x19d   :  { %24 = sbr.rel (!%p22_p2) target bundleno = 9 (0x9), region = 106 }
 0x1a2   :  { %478 = vsyncpa [#allocation3], 1 }
 0x1a3   :  { %480 = vsyncpa [#allocation3 + $0x1], 1 }
 0x1a4   :  { %481 = vsyncpa [#allocation6], 1 }
 0x1a5   :  { %483 = vsyncpa [#allocation6 + $0x1], 1 }
 0x1a6   :  { %484 = vsyncpa [#allocation4], 1 }
 0x1a7   :  { %486 = vsyncpa [#allocation4 + $0x1], 1 }

</bundles_post_ra>
